<compile_context>
chip_gen: v7x
topology: tpu7x:2x2x1
jax: 0.10.0
libtpu: 0.0.40
codegen_flags: <defaults>
</compile_context>

<pallas_src>
import jax
import jax.numpy as jnp
from jax import lax
from jax.experimental import pallas as pl
from jax.experimental.pallas import tpu as pltpu


# --------------------------------------------------------------------------- #
# helpers
# --------------------------------------------------------------------------- #
def _fold_bn(gamma, beta, mean, var, eps=1e-5):
    scale = gamma / jnp.sqrt(var + eps)
    bias = beta - mean * scale
    return scale, bias


def _vmem_budget():
    """(per-step block budget, scoped vmem limit) derived from physical VMEM."""
    try:
        cap = int(pltpu.get_tpu_info().vmem_capacity_bytes)   # 64 MiB v7x, 128 MiB v5e/v6e
    except Exception:
        cap = 64 * 1024 * 1024
    return int(cap * 0.5), int(cap * 0.8)


def _choose_batch_block(B, lane_unit, per_sample_bytes, budget_bytes):
    """Samples per grid step.

    Largest 128-lane-aligned divisor of B whose blocks fit the VMEM budget,
    preferring >=2 grid steps (pipelining / double buffering), even step counts
    (two v7x TensorCores) and ideally >=4 steps.  Falls back to Bb == B
    (full-extent blocks are always legal w.r.t. the (8,128) BlockSpec rule);
    that fallback may produce masked output stores (perf-only).
    """
    cands = [bb for bb in range(1, B + 1)
             if B % bb == 0
             and (bb * lane_unit) % 128 == 0
             and bb * per_sample_bytes <= budget_bytes]
    if not cands:
        return B

    def score(bb):
        steps = B // bb
        return (steps >= 2 and steps % 2 == 0, steps >= 2, steps >= 4, bb)

    return max(cands, key=score)


_ROLL_SIGN = None


def _roll_sign():
    """+1 if pltpu.roll follows jnp.roll (roll(x, 1)[j] == x[j-1]), else -1."""
    global _ROLL_SIGN
    if _ROLL_SIGN is None:
        def probe(x_ref, o_ref):
            o_ref[...] = pltpu.roll(x_ref[...], 1, axis=1)

        x = jnp.tile(jnp.arange(128, dtype=jnp.float32), (8, 1))
        r = pl.pallas_call(
            probe, out_shape=jax.ShapeDtypeStruct((8, 128), jnp.float32))(x)
        _ROLL_SIGN = 1 if int(r[0, 0]) == 127 else -1
    return _ROLL_SIGN


# --------------------------------------------------------------------------- #
# kernel
# --------------------------------------------------------------------------- #
def _build_kernel(*, stride_one, has_downsample, fuse1, fuse2, cdt,
                  n_lanes, lout, roll_sign):
    f32 = jnp.float32
    inv_lout = 1.0 / lout
    # Shift amounts giving the j-1 / j+1 taps regardless of roll's convention
    # (non-negative shifts only).
    if roll_sign == 1:                        # roll(x, 1)[j] == x[j-1]
        sh_m1, sh_p1 = 1, n_lanes - 1
    else:                                     # roll(x, 1)[j] == x[j+1]
        sh_m1, sh_p1 = n_lanes - 1, 1

    def kernel(*refs):
        out_ref = refs[-1]
        it = iter(refs[:-1])
        x_ref = next(it)
        xs_ref = next(it) if (has_downsample and not stride_one) else None
        w1_ref = next(it)
        b1_ref = next(it)
        w2_ref = next(it)
        b2_ref = next(it)
        wse1_ref = next(it)
        wse2_ref = next(it)
        msk_ref = next(it)
        pool_ref = next(it)
        bcast_ref = next(it)
        wd_ref = next(it) if has_downsample else None
        bd_ref = next(it) if has_downsample else None

        mlo = msk_ref[0:1, :]     # (1, N) f32: kills the j-1 tap at sample starts
        mhi = msk_ref[1:2, :]     # (1, N) f32: kills the j+1 tap at sample ends

        def conv3(v, w_ref, fused):
            """3-tap 'same' conv as matmuls; v is (C, N) float32."""
            vm = pltpu.roll(v, sh_m1, axis=1) * mlo          # v[j-1]
            vp = pltpu.roll(v, sh_p1, axis=1) * mhi          # v[j+1]
            if fused:
                # One fused K=3*C MXU push.
                vk = jnp.concatenate([vm, v, vp], axis=0).astype(cdt)
                return jnp.dot(w_ref[...], vk, preferred_element_type=f32)
            acc = jnp.dot(w_ref[1], v.astype(cdt), preferred_element_type=f32)
            acc += jnp.dot(w_ref[0], vm.astype(cdt), preferred_element_type=f32)
            acc += jnp.dot(w_ref[2], vp.astype(cdt), preferred_element_type=f32)
            return acc

        # ---- conv1 (+ folded BN1) + ReLU ----------------------------------- #
        if stride_one:
            acc1 = conv3(x_ref[...].astype(f32), w1_ref, fuse1)
        else:
            # Taps were im2col'd by the wrapper -> one fused K=3*cin dot.
            acc1 = jnp.dot(w1_ref[...], x_ref[...], preferred_element_type=f32)
        h = jnp.maximum(acc1 + b1_ref[...], 0.0)             # (planes, N) f32

        # ---- conv2 (+ folded BN2) ------------------------------------------ #
        o = conv3(h, w2_ref, fuse2) + b2_ref[...]            # (planes, N) f32

        # ---- Squeeze-and-Excitation (whole batch block at once) ------------ #
        y = jnp.dot(o.astype(cdt), pool_ref[...],
                    preferred_element_type=f32) * inv_lout            # (planes, Bb)
        z = jnp.maximum(jnp.dot(wse1_ref[...], y.astype(cdt),
                                preferred_element_type=f32), 0.0)
        pre = jnp.dot(wse2_ref[...], z.astype(cdt),
                      preferred_element_type=f32)                      # (planes, Bb)
        gate = pl.reciprocal(1.0 + jnp.exp(-pre))                      # exact sigmoid
        o = o * jnp.dot(gate.astype(cdt), bcast_ref[...],
                        preferred_element_type=f32)

        # ---- residual branch + final ReLU ----------------------------------- #
        if has_downsample:
            xs = x_ref[...] if stride_one else xs_ref[...]
            res = jnp.dot(wd_ref[...], xs, preferred_element_type=f32) + bd_ref[...]
        else:
            res = x_ref[...].astype(f32)     # x fed in f32 -> exact identity residual
        out_ref[...] = jnp.maximum(o + res, 0.0).astype(out_ref.dtype)

    return kernel


# --------------------------------------------------------------------------- #
# wrapper
# --------------------------------------------------------------------------- #
def res_se1d_forward(x, params, *, stride=1, compute_dtype=jnp.bfloat16,
                     out_dtype=None):
    """Forward pass of Res_SE1D (inference-mode BN).  x: (B, inplanes, L) f32."""
    B, cin, L = x.shape
    planes = params['w1'].shape[0]
    Lout = (L - 1) // stride + 1
    stride_one = (stride == 1)
    has_downsample = 'wd' in params
    assert has_downsample == ((cin != planes) or (stride > 1))
    out_dtype = x.dtype if out_dtype is None else out_dtype
    f32 = jnp.float32
    cdt = compute_dtype

    # ---- fold BN scales into the conv weights (exact, inference mode) ------- #
    s1, b1 = _fold_bn(*params['bn1'])
    s2, b2 = _fold_bn(*params['bn2'])
    w1s = params['w1'] * s1[:, None, None]                    # (planes, cin, 3)
    w2s = params['w2'] * s2[:, None, None]                    # (planes, planes, 3)
    b1c = b1.reshape(planes, 1).astype(f32)
    b2c = b2.reshape(planes, 1).astype(f32)
    wse1 = params['wse1'].astype(cdt)                         # (planes//r, planes)
    wse2 = params['wse2'].astype(cdt)                         # (planes, planes//r)

    # Fused K=3*C convs when the channel count is sublane-aligned (f32 taps).
    fuse2 = (planes % 8 == 0)
    w2_in = (w2s.transpose(0, 2, 1).reshape(planes, 3 * planes) if fuse2
             else w2s.transpose(2, 0, 1)).astype(cdt)

    # Identity residual is added in f32 (exact), so feed x in f32 in that case.
    x_feed_dtype = cdt if has_downsample else f32

    if stride_one:
        fuse1 = (cin % 8 == 0)
        w1_in = (w1s.transpose(0, 2, 1).reshape(planes, 3 * cin) if fuse1
                 else w1s.transpose(2, 0, 1)).astype(cdt)
        x_in = x.astype(x_feed_dtype).transpose(1, 0, 2).reshape(cin, B * L)
        xs_in = None
        x_rows = cin
    else:
        # stride > 1: im2col conv1's taps in the wrapper so the kernel never does
        # strided lane access, and conv1 becomes one fused K=3*cin dot.
        fuse1 = True
        xc = x.astype(cdt)
        xpad_w = jnp.pad(xc, ((0, 0), (0, 0), (1, 1)))
        taps = [xpad_w[:, :, k:k + stride * (Lout - 1) + 1:stride] for k in range(3)]
        xk = jnp.stack(taps, axis=1)                          # (B, 3, cin, Lout)
        x_in = xk.transpose(1, 2, 0, 3).reshape(3 * cin, B * Lout)
        xs_in = xc[:, :, ::stride].transpose(1, 0, 2).reshape(cin, B * Lout)
        w1_in = w1s.transpose(0, 2, 1).reshape(planes, 3 * cin).astype(cdt)
        x_rows = 3 * cin

    if has_downsample:
        sd, bd = _fold_bn(*params['bnd'])
        wd_in = (params['wd'][:, :, 0] * sd[:, None]).astype(cdt)   # (planes, cin)
        bd_in = bd.reshape(planes, 1).astype(f32)

    # ---- batch-block size from an actual VMEM budget -------------------------- #
    budget, vmem_limit = _vmem_budget()
    csz = jnp.dtype(cdt).itemsize
    osz = jnp.dtype(out_dtype).itemsize
    xsz = jnp.dtype(x_feed_dtype).itemsize
    per_sample = (2 * (x_rows * (L if stride_one else Lout) * xsz
                       + (cin * Lout * csz if (has_downsample and not stride_one) else 0)
                       + planes * Lout * osz)
                  + (12 * planes + 6 * cin) * Lout * 4)       # f32 in-register work
    Bb = _choose_batch_block(B, Lout, per_sample, budget)
    steps = B // Bb
    Nout = Bb * Lout                                          # lane width per step

    # Constant helper tensors (block index never changes -> resident in VMEM).
    pos = jnp.arange(Nout) % Lout
    edge_masks = jnp.stack([(pos != 0), (pos != Lout - 1)]).astype(f32)   # (2, Nout)
    seg = jnp.arange(Nout) // Lout
    pool_nb = (seg[:, None] == jnp.arange(Bb)[None, :]).astype(cdt)       # (Nout, Bb)
    bcast_bn = jnp.swapaxes(pool_nb, 0, 1)                                # (Bb, Nout)

    kernel = _build_kernel(stride_one=stride_one, has_downsample=has_downsample,
                           fuse1=fuse1, fuse2=fuse2, cdt=cdt,
                           n_lanes=Nout, lout=Lout, roll_sign=_roll_sign())

    def _const_spec(a):
        nd = a.ndim
        return pl.BlockSpec(a.shape, lambda b, nd=nd: (0,) * nd)

    inputs = [x_in]
    in_specs = [pl.BlockSpec((x_rows, Nout), lambda b: (0, b))]
    if has_downsample and not stride_one:
        inputs.append(xs_in)
        in_specs.append(pl.BlockSpec((cin, Nout), lambda b: (0, b)))
    # TODO(synk): constants below are still double-buffered by the pipeline;
    # single-buffer them (pipeline_mode buffering / stage into scratch) to free
    # additional VMEM on v7x's 64 MiB.
    const_inputs = [w1_in, b1c, w2_in, b2c, wse1, wse2, edge_masks, pool_nb, bcast_bn]
    if has_downsample:
        const_inputs += [wd_in, bd_in]
    inputs += const_inputs
    in_specs += [_const_spec(a) for a in const_inputs]

    out2d = pl.pallas_call(
        kernel,
        out_shape=jax.ShapeDtypeStruct((planes, B * Lout), out_dtype),
        grid=(steps,),
        in_specs=in_specs,
        out_specs=pl.BlockSpec((planes, Nout), lambda b: (0, b)),
        compiler_params=pltpu.CompilerParams(
            dimension_semantics=("parallel",),
            vmem_limit_bytes=vmem_limit),
    )(*inputs)

    # TODO(synk): when chaining Res_SE1D blocks, keep this (planes, B*Lout)
    # channel-major layout between blocks and transpose only at network boundaries.
    return out2d.reshape(planes, B, Lout).transpose(1, 0, 2)


# --------------------------------------------------------------------------- #
# pure-JAX reference
# --------------------------------------------------------------------------- #
def _ref_forward(x, p, *, stride=1, eps=1e-5):
    hi = lax.Precision.HIGHEST

    def conv1d(v, w, s, pad):
        return lax.conv_general_dilated(v, w, (s,), [(pad, pad)],
                                        dimension_numbers=('NCH', 'OIH', 'NCH'),
                                        precision=hi)

    def bn(v, b):
        g, be, m, vv = b
        return (v - m[None, :, None]) / jnp.sqrt(vv[None, :, None] + eps) \
            * g[None, :, None] + be[None, :, None]

    out = conv1d(x, p['w1'], stride, 1)
    out = jax.nn.relu(bn(out, p['bn1']))
    out = conv1d(out, p['w2'], 1, 1)
    out = bn(out, p['bn2'])
    y = out.mean(axis=2)                                 # (B, planes)
    y = jax.nn.relu(jnp.dot(y, p['wse1'].T, precision=hi))
    y = jax.nn.sigmoid(jnp.dot(y, p['wse2'].T, precision=hi))
    out = out * y[:, :, None]
    if 'wd' in p:
        res = bn(conv1d(x, p['wd'], stride, 0), p['bnd'])
    else:
        res = x
    return jax.nn.relu(out + res)


# --------------------------------------------------------------------------- #
# deterministic params
# --------------------------------------------------------------------------- #
def init_params(key, inplanes, planes, reduction=4, stride=1):
    ks = jax.random.split(key, 8)

    def bn_params(k, c):
        k1, k2, k3, k4 = jax.random.split(k, 4)
        gamma = 1.0 + 0.1 * jax.random.normal(k1, (c,), jnp.float32)
        beta = 0.1 * jax.random.normal(k2, (c,), jnp.float32)
        mean = 0.1 * jax.random.normal(k3, (c,), jnp.float32)
        var = 1.0 + 0.1 * jnp.abs(jax.random.normal(k4, (c,), jnp.float32))
        return (gamma, beta, mean, var)

    p = {
        'w1': 0.3 * jax.random.normal(ks[0], (planes, inplanes, 3), jnp.float32),
        'bn1': bn_params(ks[1], planes),
        'w2': 0.3 * jax.random.normal(ks[2], (planes, planes, 3), jnp.float32),
        'bn2': bn_params(ks[3], planes),
        'wse1': 0.3 * jax.random.normal(ks[4], (planes // reduction, planes), jnp.float32),
        'wse2': 0.3 * jax.random.normal(ks[5], (planes, planes // reduction), jnp.float32),
    }
    if inplanes != planes or stride > 1:
        p['wd'] = 0.3 * jax.random.normal(ks[6], (planes, inplanes, 1), jnp.float32)
        p['bnd'] = bn_params(ks[7], planes)
    return p


if __name__ == "__main__":
    key = jax.random.PRNGKey(0)
    B, L = 2, 128     # lane-aligned length so per-step blocks are 128-lane dense

    configs = [
        # (inplanes, planes, stride, compute_dtype, tol)
        (4, 8, 1, jnp.float32, 5e-4),     # downsample (1x1 conv) residual path
        (8, 8, 1, jnp.float32, 5e-4),     # identity residual path (fused K=3C conv1)
        (4, 8, 2, jnp.float32, 5e-4),     # strided conv (wrapper im2col) path
        (4, 8, 1, jnp.bfloat16, 1e-1),    # bf16 MXU operands (default fast path)
    ]
    for idx, (cin, planes, stride, cdt, tol) in enumerate(configs):
        kxi, kpi = jax.random.split(jax.random.fold_in(key, idx))
        x = jax.random.normal(kxi, (B, cin, L), jnp.float32)
        params = init_params(kpi, cin, planes, reduction=4, stride=stride)

        out = res_se1d_forward(x, params, stride=stride, compute_dtype=cdt)
        out = jax.block_until_ready(out)
        ref = _ref_forward(x, params, stride=stride)

        assert out.shape == ref.shape, (idx, out.shape, ref.shape)
        err = float(jnp.max(jnp.abs(out - ref)))
        assert bool(jnp.allclose(out, ref, atol=tol, rtol=tol)), (idx, err)

    print("KERNEL_OK")
</pallas_src>

<mosaic_0001>
module attributes {stable_mosaic.version = 11 : i64} {
  func.func @probe(%arg0: memref<8x128xf32, #tpu.memory_space<vmem>>, %arg1: memref<8x128xf32, #tpu.memory_space<vmem>>) attributes {dimension_semantics = [], scalar_prefetch = 0 : i64, scratch_operands = 0 : i64, tpu.core_type = #tpu.core_type<tc>} {
    %c0 = arith.constant 0 : index
    %c0_0 = arith.constant 0 : index
    %0 = vector.load %arg0[%c0, %c0_0] : memref<8x128xf32, #tpu.memory_space<vmem>>, vector<8x128xf32>
    %c1_i32 = arith.constant 1 : i32
    %1 = tpu.dynamic_rotate %0 by %c1_i32 dim 1 : vector<8x128xf32>, i32 -> vector<8x128xf32>
    %c0_1 = arith.constant 0 : index
    %c0_2 = arith.constant 0 : index
    %2 = vector.load %arg1[%c0_1, %c0_2] : memref<8x128xf32, #tpu.memory_space<vmem>>, vector<8x128xf32>
    tpu.vector_store %arg1[%c0_1, %c0_2], %1 {strides = array<i32>} : memref<8x128xf32, #tpu.memory_space<vmem>>, vector<8x128xf32>,
    return
  }
}

</mosaic_0001>

<bundles_post_ra>
// kernel: tpu_custom_call.1
= control target key start
LH: loop header
LB: loop body
LE: loop exit
PB: predicated region body
PF: predicated region fallthrough
CT: control target
= control target key end

     0   :  { %6 = vsyncpa [#allocation3], 0  ;;  %s128_s0 = inlined_call_operand.hbm [shape: f32[8,128], index: 0, kind: input, shape index: {}]   ;;  %s129_s1 = inlined_call_operand.hbm [shape: f32[8,128], index: 1, kind: output, shape index: {}]  }
   0x1   :  { %7 = vsyncpa [#allocation4], 0  ;;  %s91_s6 = smov [#allocation2]   ;;  %s43_s10 = scalar_lea.hbm %s128_s0, 128 }
   0x2   :  { %s14_s7 = sshll.u32 %s91_s6, 4  ;;  %p44_p0 = scmp.ne.s32.totalorder %s128_s0, %s43_s10  ;;  %s15_s7 = int_to_ptr.vmem [resolvable:$true] %s14_s7 }
   0x3   :  { %p47_p1 = scmp.lt.u32.totalorder %s43_s10, %s128_s0 }
   0x5   :  { %p49_p2 = pnand %p47_p1, %p44_p0 }
   0x7   :  { %52 = shalt.err (!%p49_p2)
}
   0x8   :  { %s53_s15 = scalar_lea.vmem %s15_s7, 128  ;;  %p58_p4 = scmp.lt.s32.totalorder %s15_s7, %s15_s7 }
   0x9   :  { %p54_p3 = scmp.ne.s32.totalorder %s15_s7, %s53_s15  ;;  %p59_p5 = scmp.lt.s32.totalorder %s53_s15, %s53_s15 }
   0xb   :  { %p60_p6 = por %p59_p5, %p58_p4 }
   0xd   :  { %p61_p7 = pnand %p60_p6, %p54_p3 }
   0xf   :  { %64 = shalt.err (!%p61_p7)
}
  0x10   :  { %17 = dma.hbm_to_vmem [thread:$0]  %s128_s0, 128, %s15_s7, [#allocation3]  }
  0x11   :  { %87 = dma.done.wait [#allocation3], 128  }
  0x12   :  { %88 = vsyncadd [#allocation3], 4294967168  ;;  %v21_v0 = vld [vmem:[#allocation2] sm:$0xff]  ;;  %s92_s18 = smov 1   ;;  %s93_s19 = smov [#allocation5]  }
  0x13   :  { %22 = vrot.lane.b32.xlu0 %v21_v0, %s92_s18  ;;  %s31_s20 = sshll.u32 %s93_s19, 4  ;;  %s32_s20 = int_to_ptr.vmem [resolvable:$true] %s31_s20 }
  0x14   :  { %s65_s21 = scalar_lea.vmem %s32_s20, 128  ;;  %p70_p9 = scmp.lt.s32.totalorder %s32_s20, %s32_s20 }
  0x15   :  { %p66_p8 = scmp.ne.s32.totalorder %s32_s20, %s65_s21  ;;  %p71_p10 = scmp.lt.s32.totalorder %s65_s21, %s65_s21 }
  0x17   :  { %p72_p11 = por %p71_p10, %p70_p9 }
  0x19   :  { %p73_p12 = pnand %p72_p11, %p66_p8 }
  0x85   :  { %v23_v1 = vpop.permute.xlu0 %22 }
  0x86   :  { %24 = vst [vmem:[#allocation5] sm:$0xff] %v23_v1 }
  0x87   :  { %76 = shalt.err (!%p73_p12)
}
  0x88   :  { %s77_s0 = scalar_lea.hbm %s129_s1, 128 }
  0x89   :  { %p78_p13 = scmp.ne.s32.totalorder %s129_s1, %s77_s0  ;;  %p81_p0 = scmp.lt.u32.totalorder %s77_s0, %s129_s1 }
  0x8b   :  { %p83_p1 = pnand %p81_p0, %p78_p13 }
  0x8d   :  { %86 = shalt.err (!%p83_p1)
}
  0x8e   :  { %34 = dma.vmem_to_hbm [thread:$0]  %s32_s20, 128, %s129_s1, [#allocation4]  }
  0x8f   :  { %89 = dma.done.wait [#allocation4], 128  }
  0x90   :  { %90 = vsyncadd [#allocation4], 4294967168 }
  0x91   :  { %38 = vsyncpa [#allocation3], 1 }
  0x92   :  { %39 = vsyncpa [#allocation4], 1 }

</bundles_post_ra>
